<compile_context>
chip_gen: v6e
topology: v6e:2x2x1
jax: 0.10.0
libtpu: 0.0.40
codegen_flags: <defaults>
</compile_context>

<pallas_src>
import functools

import jax
import jax.numpy as jnp
from jax import lax
from jax.experimental import pallas as pl
from jax.experimental.pallas import tpu as pltpu

KH = KW = 3
IC, OC = 3, 6


def _round_up(x, m):
    return (x + m - 1) // m * m


def _conv_taps_kernel(x_ref, w_ref, b_ref, o_ref, *, W, OHW):
    # x_ref: (1, IC, HWP)   flattened + lane-padded NCHW image for one batch
    # w_ref: (OC, KH*KW*IC) columns ordered (kh, kw) major, ic fastest
    # b_ref: (OC, 1)
    # o_ref: (1, OC, OHW)   lane-dense "wide" output (OH * W columns)
    x = x_ref[0]                                   # (IC, HWP)
    w = w_ref[...]                                 # (OC, K)
    b = b_ref[...]                                 # (OC, 1)
    acc = jnp.zeros((OC, OHW), jnp.float32)
    for kh in range(KH):
        for kw in range(KW):
            t = kh * KW + kw
            shift = kh * W + kw
            xs = x[:, shift:shift + OHW]           # (IC, OHW) shifted tap window
            wt = w[:, t * IC:(t + 1) * IC]         # (OC, IC)  this tap's weights
            acc = acc + jnp.dot(wt, xs, preferred_element_type=jnp.float32)
    o_ref[0] = (acc + b).astype(o_ref.dtype)


def conv_demo_forward(x_nchw, weight_oihw, bias):
    """Equivalent of convDemo.forward(x) = Conv2d(3, 6, k=3, stride=1, pad=0)(x)."""
    N, C, H, W = x_nchw.shape
    assert C == IC
    OH, OW = H - KH + 1, W - KW + 1
    OHW = OH * W                                   # wide rows; last W-OW cols cropped
    K = KH * KW * IC
    # Enough lane padding that the largest tap shift + window stays in bounds.
    HWP = _round_up((KH - 1) * W + (KW - 1) + OHW, 128)

    x_flat = x_nchw.reshape(N, IC, H * W)          # contiguous, metadata-only
    x_pad = jnp.pad(x_flat, ((0, 0), (0, 0), (0, HWP - H * W)))
    # (OC, IC, KH, KW) -> (OC, KH, KW, IC) -> (OC, K): (kh, kw) major, ic fastest.
    w_mat = jnp.transpose(weight_oihw, (0, 2, 3, 1)).reshape(OC, K)
    b_col = bias.reshape(OC, 1).astype(jnp.float32)

    kernel = functools.partial(_conv_taps_kernel, W=W, OHW=OHW)

    itemsize = jnp.dtype(x_nchw.dtype).itemsize
    flops = 2 * N * OHW * K * OC
    bytes_accessed = (x_pad.size + w_mat.size + b_col.size + N * OC * OHW) * itemsize

    out_wide = pl.pallas_call(
        kernel,
        out_shape=jax.ShapeDtypeStruct((N, OC, OHW), x_nchw.dtype),
        grid_spec=pltpu.PrefetchScalarGridSpec(
            num_scalar_prefetch=0,
            grid=(N,),
            in_specs=[
                pl.BlockSpec((1, IC, HWP), lambda n: (n, 0, 0)),
                pl.BlockSpec((OC, K), lambda n: (0, 0)),     # resident across steps
                pl.BlockSpec((OC, 1), lambda n: (0, 0)),     # resident across steps
            ],
            out_specs=pl.BlockSpec((1, OC, OHW), lambda n: (n, 0, 0)),
        ),
        compiler_params=pltpu.CompilerParams(
            dimension_semantics=("parallel",)),
        cost_estimate=pl.CostEstimate(
            flops=flops, transcendentals=0, bytes_accessed=bytes_accessed),
    )(x_pad, w_mat, b_col)

    # (N, OC, OH*W) -> (N, OC, OH, W) -> crop garbage columns -> NCHW output.
    return out_wide.reshape(N, OC, OH, W)[:, :, :, :OW]


if __name__ == "__main__":
    key = jax.random.PRNGKey(0)
    kx, kw, kb = jax.random.split(key, 3)

    # Small shapes consistent with the module: x is NCHW with 3 input channels.
    x = jax.random.normal(kx, (2, IC, 16, 16), dtype=jnp.float32)

    # Deterministic parameter init (same shapes as nn.Conv2d(3, 6, 3)).
    fan_in = IC * KH * KW
    bound = 1.0 / (fan_in ** 0.5)
    weight = jax.random.uniform(kw, (OC, IC, KH, KW), jnp.float32, -bound, bound)
    bias = jax.random.uniform(kb, (OC,), jnp.float32, -bound, bound)

    fwd = jax.jit(conv_demo_forward)
    y = jax.block_until_ready(fwd(x, weight, bias))
    assert y.shape == (2, OC, 14, 14), y.shape

    # Sanity check against XLA's conv.
    y_ref = lax.conv_general_dilated(
        x, weight, window_strides=(1, 1), padding="VALID",
        dimension_numbers=("NCHW", "OIHW", "NCHW"),
        precision=lax.Precision.HIGHEST,
    ) + bias.reshape(1, OC, 1, 1)
    assert jnp.allclose(y, y_ref, rtol=1e-2, atol=1e-2), float(
        jnp.max(jnp.abs(y - y_ref)))

    print("KERNEL_OK")
</pallas_src>

<mosaic_0001>
module attributes {stable_mosaic.version = 11 : i64} {
  func.func @_conv_taps_kernel(%arg0: i32, %arg1: memref<1x3x384xf32, #tpu.memory_space<vmem>>, %arg2: memref<6x27xf32, #tpu.memory_space<vmem>>, %arg3: memref<6x1xf32, #tpu.memory_space<vmem>>, %arg4: memref<1x6x224xf32, #tpu.memory_space<vmem>>) attributes {dimension_semantics = [#tpu.dimension_semantics<parallel>], iteration_bounds = array<i64: 2>, scalar_prefetch = 0 : i64, scratch_operands = 0 : i64, tpu.core_type = #tpu.core_type<tc>, window_params = [{transform_indices = @transform_0, window_bounds = array<i64: 1, 3, 384>}, {pipeline_mode = #tpu.pipeline_mode<synchronous>, transform_indices = @transform_1, window_bounds = array<i64: 6, 27>}, {pipeline_mode = #tpu.pipeline_mode<synchronous>, transform_indices = @transform_2, window_bounds = array<i64: 6, 1>}, {transform_indices = @transform_3, window_bounds = array<i64: 1, 6, 224>}]} {
    %c0 = arith.constant 0 : index
    %c0_0 = arith.constant 0 : index
    %c0_1 = arith.constant 0 : index
    %0 = vector.load %arg1[%c0, %c0_0, %c0_1] : memref<1x3x384xf32, #tpu.memory_space<vmem>>, vector<1x3x384xf32>
    %1 = vector.shape_cast %0 : vector<1x3x384xf32> to vector<3x384xf32>
    %c0_2 = arith.constant 0 : index
    %c0_3 = arith.constant 0 : index
    %2 = vector.load %arg2[%c0_2, %c0_3] : memref<6x27xf32, #tpu.memory_space<vmem>>, vector<6x27xf32>
    %c0_4 = arith.constant 0 : index
    %c0_5 = arith.constant 0 : index
    %3 = vector.load %arg3[%c0_4, %c0_5] : memref<6x1xf32, #tpu.memory_space<vmem>>, vector<6x1xf32>
    %cst = arith.constant 0.000000e+00 : f32
    %4 = vector.broadcast %cst : f32 to vector<6x224xf32>
    %5 = vector.extract_strided_slice %1 {offsets = [0, 0], sizes = [3, 224], strides = [1, 1]} : vector<3x384xf32> to vector<3x224xf32>
    %6 = vector.extract_strided_slice %2 {offsets = [0, 0], sizes = [6, 3], strides = [1, 1]} : vector<6x27xf32> to vector<6x3xf32>
    %cst_6 = arith.constant dense<0.000000e+00> : vector<6x224xf32>
    %7 = tpu.matmul %6, %5, %cst_6 {dimension_numbers = #tpu.dot_dimension_numbers<[1], [0], [0], [1], [0, 0, 1, 1], [], []>} : vector<6x3xf32>, vector<3x224xf32>, vector<6x224xf32> -> vector<6x224xf32>
    %8 = arith.addf %4, %7 : vector<6x224xf32>
    %9 = vector.extract_strided_slice %1 {offsets = [0, 1], sizes = [3, 224], strides = [1, 1]} : vector<3x384xf32> to vector<3x224xf32>
    %10 = vector.extract_strided_slice %2 {offsets = [0, 3], sizes = [6, 3], strides = [1, 1]} : vector<6x27xf32> to vector<6x3xf32>
    %cst_7 = arith.constant dense<0.000000e+00> : vector<6x224xf32>
    %11 = tpu.matmul %10, %9, %cst_7 {dimension_numbers = #tpu.dot_dimension_numbers<[1], [0], [0], [1], [0, 0, 1, 1], [], []>} : vector<6x3xf32>, vector<3x224xf32>, vector<6x224xf32> -> vector<6x224xf32>
    %12 = arith.addf %8, %11 : vector<6x224xf32>
    %13 = vector.extract_strided_slice %1 {offsets = [0, 2], sizes = [3, 224], strides = [1, 1]} : vector<3x384xf32> to vector<3x224xf32>
    %14 = vector.extract_strided_slice %2 {offsets = [0, 6], sizes = [6, 3], strides = [1, 1]} : vector<6x27xf32> to vector<6x3xf32>
    %cst_8 = arith.constant dense<0.000000e+00> : vector<6x224xf32>
    %15 = tpu.matmul %14, %13, %cst_8 {dimension_numbers = #tpu.dot_dimension_numbers<[1], [0], [0], [1], [0, 0, 1, 1], [], []>} : vector<6x3xf32>, vector<3x224xf32>, vector<6x224xf32> -> vector<6x224xf32>
    %16 = arith.addf %12, %15 : vector<6x224xf32>
    %17 = vector.extract_strided_slice %1 {offsets = [0, 16], sizes = [3, 224], strides = [1, 1]} : vector<3x384xf32> to vector<3x224xf32>
    %18 = vector.extract_strided_slice %2 {offsets = [0, 9], sizes = [6, 3], strides = [1, 1]} : vector<6x27xf32> to vector<6x3xf32>
    %cst_9 = arith.constant dense<0.000000e+00> : vector<6x224xf32>
    %19 = tpu.matmul %18, %17, %cst_9 {dimension_numbers = #tpu.dot_dimension_numbers<[1], [0], [0], [1], [0, 0, 1, 1], [], []>} : vector<6x3xf32>, vector<3x224xf32>, vector<6x224xf32> -> vector<6x224xf32>
    %20 = arith.addf %16, %19 : vector<6x224xf32>
    %21 = vector.extract_strided_slice %1 {offsets = [0, 17], sizes = [3, 224], strides = [1, 1]} : vector<3x384xf32> to vector<3x224xf32>
    %22 = vector.extract_strided_slice %2 {offsets = [0, 12], sizes = [6, 3], strides = [1, 1]} : vector<6x27xf32> to vector<6x3xf32>
    %cst_10 = arith.constant dense<0.000000e+00> : vector<6x224xf32>
    %23 = tpu.matmul %22, %21, %cst_10 {dimension_numbers = #tpu.dot_dimension_numbers<[1], [0], [0], [1], [0, 0, 1, 1], [], []>} : vector<6x3xf32>, vector<3x224xf32>, vector<6x224xf32> -> vector<6x224xf32>
    %24 = arith.addf %20, %23 : vector<6x224xf32>
    %25 = vector.extract_strided_slice %1 {offsets = [0, 18], sizes = [3, 224], strides = [1, 1]} : vector<3x384xf32> to vector<3x224xf32>
    %26 = vector.extract_strided_slice %2 {offsets = [0, 15], sizes = [6, 3], strides = [1, 1]} : vector<6x27xf32> to vector<6x3xf32>
    %cst_11 = arith.constant dense<0.000000e+00> : vector<6x224xf32>
    %27 = tpu.matmul %26, %25, %cst_11 {dimension_numbers = #tpu.dot_dimension_numbers<[1], [0], [0], [1], [0, 0, 1, 1], [], []>} : vector<6x3xf32>, vector<3x224xf32>, vector<6x224xf32> -> vector<6x224xf32>
    %28 = arith.addf %24, %27 : vector<6x224xf32>
    %29 = vector.extract_strided_slice %1 {offsets = [0, 32], sizes = [3, 224], strides = [1, 1]} : vector<3x384xf32> to vector<3x224xf32>
    %30 = vector.extract_strided_slice %2 {offsets = [0, 18], sizes = [6, 3], strides = [1, 1]} : vector<6x27xf32> to vector<6x3xf32>
    %cst_12 = arith.constant dense<0.000000e+00> : vector<6x224xf32>
    %31 = tpu.matmul %30, %29, %cst_12 {dimension_numbers = #tpu.dot_dimension_numbers<[1], [0], [0], [1], [0, 0, 1, 1], [], []>} : vector<6x3xf32>, vector<3x224xf32>, vector<6x224xf32> -> vector<6x224xf32>
    %32 = arith.addf %28, %31 : vector<6x224xf32>
    %33 = vector.extract_strided_slice %1 {offsets = [0, 33], sizes = [3, 224], strides = [1, 1]} : vector<3x384xf32> to vector<3x224xf32>
    %34 = vector.extract_strided_slice %2 {offsets = [0, 21], sizes = [6, 3], strides = [1, 1]} : vector<6x27xf32> to vector<6x3xf32>
    %cst_13 = arith.constant dense<0.000000e+00> : vector<6x224xf32>
    %35 = tpu.matmul %34, %33, %cst_13 {dimension_numbers = #tpu.dot_dimension_numbers<[1], [0], [0], [1], [0, 0, 1, 1], [], []>} : vector<6x3xf32>, vector<3x224xf32>, vector<6x224xf32> -> vector<6x224xf32>
    %36 = arith.addf %32, %35 : vector<6x224xf32>
    %37 = vector.extract_strided_slice %1 {offsets = [0, 34], sizes = [3, 224], strides = [1, 1]} : vector<3x384xf32> to vector<3x224xf32>
    %38 = vector.extract_strided_slice %2 {offsets = [0, 24], sizes = [6, 3], strides = [1, 1]} : vector<6x27xf32> to vector<6x3xf32>
    %cst_14 = arith.constant dense<0.000000e+00> : vector<6x224xf32>
    %39 = tpu.matmul %38, %37, %cst_14 {dimension_numbers = #tpu.dot_dimension_numbers<[1], [0], [0], [1], [0, 0, 1, 1], [], []>} : vector<6x3xf32>, vector<3x224xf32>, vector<6x224xf32> -> vector<6x224xf32>
    %40 = arith.addf %36, %39 : vector<6x224xf32>
    %41 = vector.broadcast %3 : vector<6x1xf32> to vector<6x224xf32>
    %42 = arith.addf %40, %41 : vector<6x224xf32>
    %c0_15 = arith.constant 0 : index
    %c0_16 = arith.constant 0 : index
    %c0_17 = arith.constant 0 : index
    %43 = vector.load %arg4[%c0_15, %c0_16, %c0_17] : memref<1x6x224xf32, #tpu.memory_space<vmem>>, vector<1x6x224xf32>
    %44 = vector.shape_cast %43 : vector<1x6x224xf32> to vector<6x224xf32>
    %45 = vector.shape_cast %42 : vector<6x224xf32> to vector<1x6x224xf32>
    tpu.vector_store %arg4[%c0_15, %c0_16, %c0_17], %45 {strides = array<i32>} : memref<1x6x224xf32, #tpu.memory_space<vmem>>, vector<1x6x224xf32>,
    return
  }
  func.func @transform_0(%arg0: i32) -> (i32, i32, i32) {
    %c0_i32 = arith.constant 0 : i32
    %c0_i32_0 = arith.constant 0 : i32
    %c0_i32_1 = arith.constant 0 : i32
    return %arg0, %c0_i32, %c0_i32_0 : i32, i32, i32
  }
  func.func @transform_1(%arg0: i32) -> (i32, i32) {
    %c0_i32 = arith.constant 0 : i32
    %c0_i32_0 = arith.constant 0 : i32
    %c0_i32_1 = arith.constant 0 : i32
    return %c0_i32, %c0_i32_0 : i32, i32
  }
  func.func @transform_2(%arg0: i32) -> (i32, i32) {
    %c0_i32 = arith.constant 0 : i32
    %c0_i32_0 = arith.constant 0 : i32
    %c0_i32_1 = arith.constant 0 : i32
    return %c0_i32, %c0_i32_0 : i32, i32
  }
  func.func @transform_3(%arg0: i32) -> (i32, i32, i32) {
    %c0_i32 = arith.constant 0 : i32
    %c0_i32_0 = arith.constant 0 : i32
    %c0_i32_1 = arith.constant 0 : i32
    return %arg0, %c0_i32, %c0_i32_0 : i32, i32, i32
  }
}

</mosaic_0001>

<bundles_post_ra>
// kernel: conv_demo_forward.1
= control target key start
LH: loop header
LB: loop body
LE: loop exit
PB: predicated region body
PF: predicated region fallthrough
CT: control target
= control target key end

     0   :  { %s1134_s12 = smov 0   ;;  %s1201_s0 = inlined_call_operand.vmem [shape: f32[2,3,384], index: 0, kind: input, shape index: {}]   ;;  %s1202_s1 = inlined_call_operand.vmem [shape: f32[6,27], index: 1, kind: input, shape index: {}]   ;;  %s1203_s2 = inlined_call_operand.vmem [shape: f32[6,1], index: 2, kind: input, shape index: {}]   ;;  %s1204_s3 = inlined_call_operand.vmem [shape: f32[2,6,224], index: 3, kind: output, shape index: {}]  }
   0x1 LB: > { %s1023_s13 = sadd.s32 4294967295, %s1095_s12   ;;  %p1027_p0 = scmp.ge.s32.totalorder %s1095_s12, 1  ;;  %s1095_s12 = sphi %s1134_s12, %s13_s12  }
   0x2   : > { %p137_p1 = scmp.lt.s32.totalorder %s1095_s12, 3 }
   0x4   : > { %p138_p2 = pnand %p1027_p0, %p137_p1 }
   0x5   : > { %p161_p3 = scmp.lt.s32.totalorder (!%p138_p2), %s1023_s13, 1  ;;  %s1097_s16 = smov (!%p138_p2), 125  }
   0x6   : > { %141 = sbr.rel (%p138_p2) target bundleno = 381 (0x17d), region = 32  ;;  %s1099_s18 = smov (!%p138_p2), 122  }
   0x7   : > { %s1100_s22 = smov (!%p138_p2), 127   ;;  %s1101_s23 = smov (!%p138_p2), 126  }
   0x8   : > { %s1102_s24 = smov (!%p138_p2), 112   ;;  %s1103_s25 = smov (!%p138_p2), 111  }
   0x9   : > { %s1104_s26 = smov (!%p138_p2), 116   ;;  %s1105_s27 = smov (!%p138_p2), 119  }
   0xa   : > { %s1106_s28 = smov (!%p138_p2), 110   ;;  %s1107_s29 = smov (!%p138_p2), 96  }
   0xb   : > { %v173_v0 = vld [vmem:[%s1202_s1] sm:$0x3f]  ;;  %v1098_v1 = vmov 0.0   ;;  %s1206_s13 = smov (!%p161_p3, %s1023_s13), 1  ;;  %vm189_vm0 = vcmask 1042432   ;;  %vm186_vm1 = vcmask 23552  }
   0xc   : > { %176 = vrot.lane.b32.xlu1 %v173_v0, %s1097_s16  ;;  %258 = vmatprep.mubr.f32.mxu0 %v1098_v1  ;;  %s1061_s17 = smul.u32 12, %s1206_s13  ;;  %s1108_s30 = smov 95   ;;  %v1112_v5 = vmov 0   ;;  %v174_v6 = vld [vmem:[%s1203_s2] sm:$0x3f]  ;;  %vm184_vm2 = vcmask 1039360  }
   0xd   : > { %335 = vmatprep.mubr.f32.mxu1 %v1098_v1  ;;  %s1109_s4 = smov 113   ;;  %s1110_s5 = smov 94   ;;  %1087 = vset.pattern.permute.xlu0 %v1112_v5  ;;  %vm348_vm3 = vcmask 1031168   ;;  %vm435_vm4 = vcmask 916480   ;;  %vm522_vm5 = vcmask 908288   ;;  %vm609_vm6 = vcmask 900096  }
   0xe   : > { %s1153_s21 = scalar_lea.vmem %s1201_s0, %s1061_s17  ;;  %s1111_s6 = smov 107   ;;  %vm696_vm7 = vcmask 785408   ;;  %vm786_vm8 = vcmask 777216   ;;  %vm876_vm9 = vcmask 769024   ;;  %vm966_vm10 = vcmask 783360  }
   0xf   : > { %v171_v2 = vld [vmem:[%s1153_s21] sm:$0x77]  ;;  %v172_v4 = vld [vmem:[%s1153_s21 + $0x8] sm:$0x7]  ;;  %s1113_s7 = smov 104   ;;  %s1060_s10 = sshll.u32 %s1206_s13, 4 }
  0x10   : > { %342 = vrot.lane.b32.xlu1 %v173_v0, %s1099_s18  ;;  %180 = vrot.lane.b32.xlu0 %v171_v2, %s1100_s22  ;;  %v179_v3 = vcombine.high %v171_v2, %v171_v2  ;;  %s170_s15 = scalar_lea.vmem %s1204_s3, %s1060_s10 }
  0x12   : > { %1034 = vmatprep.subr.msk.mxu1 %vm189_vm0, %v179_v3 }
  0x13   : > { %1035 = vmatpush1.msk.msra.mxu1 %vm189_vm0, %v171_v2 }
  0x14   : > { %344 = vrot.lane.b32.xlu1 %v171_v2, %s1101_s23  ;;  %182 = vrot.lane.b32.xlu0 %v179_v3, %s1100_s22 }
  0x15   : > { %1036 = vmatmul.mubr.msk.f32.vlgmr.msra.gmra.mxu1 %vm186_vm1, %v173_v0 }
  0x16   : > { %507 = vmatprep.mubr.f32.mxu1 %v1098_v1 }
  0x18   : > { %433 = vrot.lane.b32.xlu1 %v179_v3, %s1102_s24  ;;  %346 = vrot.lane.b32.xlu0 %v179_v3, %s1101_s23 }
  0x1c   : > { %518 = vrot.lane.b32.xlu1 %v171_v2, %s1103_s25  ;;  %431 = vrot.lane.b32.xlu0 %v171_v2, %s1102_s24 }
  0x20   : > { %516 = vrot.lane.b32.xlu1 %v173_v0, %s1104_s26  ;;  %429 = vrot.lane.b32.xlu0 %v173_v0, %s1105_s27 }
  0x24   : > { %607 = vrot.lane.b32.xlu1 %v179_v3, %s1106_s28  ;;  %520 = vrot.lane.b32.xlu0 %v179_v3, %s1103_s25 }
  0x28   : > { %692 = vrot.lane.b32.xlu1 %v171_v2, %s1107_s29  ;;  %605 = vrot.lane.b32.xlu0 %v171_v2, %s1106_s28 }
  0x2c   : > { %782 = vrot.lane.b32.xlu1 %v179_v3, %s1108_s30  ;;  %603 = vrot.lane.b32.xlu0 %v173_v0, %s1109_s4 }
  0x30   : > { %690 = vrot.lane.b32.xlu1 %v173_v0, %s1106_s28  ;;  %694 = vrot.lane.b32.xlu0 %v179_v3, %s1107_s29 }
  0x34   : > { %872 = vrot.lane.b32.xlu1 %v179_v3, %s1110_s5  ;;  %784 = vrot.lane.b32.xlu0 %v172_v4, %s1108_s30 }
  0x38   : > { %777 = vrot.lane.b32.xlu1 %v173_v0, %s1111_s6  ;;  %780 = vrot.lane.b32.xlu0 %v171_v2, %s1108_s30 }
  0x3c   : > { %868 = vrot.lane.b32.xlu1 %v173_v0, %s1113_s7  ;;  %874 = vrot.lane.b32.xlu0 %v172_v4, %s1110_s5 }
  0x40   : > { %870 = vrot.lane.b32.xlu0 %v171_v2, %s1110_s5 }
  0x44   : > { %960 = vperm.xlu0 %1087, %v174_v6  }
  0x7e   : > { %v177_v7 = vpop.permute.xlu1 %176 }
  0x82   : > { %v343_v8 = vpop.permute.xlu1 %342  ;;  %v181_v9 = vpop.permute.xlu0 %180 }
  0x86   : > { %v345_v10 = vpop.permute.xlu1 %344  ;;  %v183_v11 = vpop.permute.xlu0 %182 }
  0x87   : > { %1031 = vmatprep.subr.msk.mxu0 %vm189_vm0, %v183_v11  ;;  %v185_v12 = vsel %vm184_vm2, %v181_v9, %v183_v11 }
  0x88   : > { %1032 = vmatpush1.msk.msra.mxu0 %vm189_vm0, %v185_v12 }
  0x89   : > { %1033 = vmatmul.mubr.msk.f32.vlgmr.msra.gmra.mxu0 %vm186_vm1, %v177_v7 }
  0x8a   : > { %v434_v13 = vpop.permute.xlu1 %433  ;;  %v347_v14 = vpop.permute.xlu0 %346  ;;  %420 = vmatprep.mubr.f32.mxu0 %v1098_v1 }
  0x8b   : > { %1040 = vmatprep.subr.msk.mxu1 %vm189_vm0, %v434_v13  ;;  %v349_v15 = vsel %vm348_vm3, %v345_v10, %v347_v14  ;;  %1037 = vmatprep.subr.msk.mxu0 %vm189_vm0, %v347_v14 }
  0x8c   : > { %1038 = vmatpush1.msk.msra.mxu0 %vm189_vm0, %v349_v15 }
  0x8d   : > { %1039 = vmatmul.mubr.msk.f32.vlgmr.msra.gmra.mxu0 %vm186_vm1, %v343_v8 }
  0x8e   : > { %v519_v16 = vpop.permute.xlu1 %518  ;;  %v432_v17 = vpop.permute.xlu0 %431  ;;  %594 = vmatprep.mubr.f32.mxu0 %v1098_v1 }
  0x8f   : > { %v436_v18 = vsel %vm435_vm4, %v432_v17, %v434_v13 }
  0x90   : > { %1041 = vmatpush1.msk.msra.mxu1 %vm189_vm0, %v436_v18 }
  0x92   : > { %v517_v19 = vpop.permute.xlu1 %516  ;;  %v430_v20 = vpop.permute.xlu0 %429 }
  0x93   : > { %1042 = vmatmul.mubr.msk.f32.vlgmr.msra.gmra.mxu1 %vm186_vm1, %v430_v20 }
  0x94   : > { %681 = vmatprep.mubr.f32.mxu1 %v1098_v1 }
  0x96   : > { %v608_v21 = vpop.permute.xlu1 %607  ;;  %v521_v22 = vpop.permute.xlu0 %520 }
  0x97   : > { %1046 = vmatprep.subr.msk.mxu1 %vm189_vm0, %v608_v21  ;;  %v523_v23 = vsel %vm522_vm5, %v519_v16, %v521_v22  ;;  %1043 = vmatprep.subr.msk.mxu0 %vm189_vm0, %v521_v22 }
  0x98   : > { %1044 = vmatpush1.msk.msra.mxu0 %vm189_vm0, %v523_v23 }
  0x99   : > { %1045 = vmatmul.mubr.msk.f32.vlgmr.msra.gmra.mxu0 %vm186_vm1, %v517_v19 }
  0x9a   : > { %v693_v24 = vpop.permute.xlu1 %692  ;;  %v606_v25 = vpop.permute.xlu0 %605  ;;  %768 = vmatprep.mubr.f32.mxu0 %v1098_v1 }
  0x9b   : > { %v610_v26 = vsel %vm609_vm6, %v606_v25, %v608_v21 }
  0x9c   : > { %1047 = vmatpush1.msk.msra.mxu1 %vm189_vm0, %v610_v26 }
  0x9e   : > { %v783_v27 = vpop.permute.xlu1 %782  ;;  %v604_v28 = vpop.permute.xlu0 %603 }
  0x9f   : > { %1048 = vmatmul.mubr.msk.f32.vlgmr.msra.gmra.mxu1 %vm186_vm1, %v604_v28 }
  0xa0   : > { %859 = vmatprep.mubr.f32.mxu1 %v1098_v1 }
  0xa2   : > { %v691_v29 = vpop.permute.xlu1 %690  ;;  %v695_v30 = vpop.permute.xlu0 %694 }
  0xa3   : > { %v697_v31 = vsel %vm696_vm7, %v693_v24, %v695_v30  ;;  %1049 = vmatprep.subr.msk.mxu0 %vm189_vm0, %v695_v30 }
  0xa4   : > { %1050 = vmatpush1.msk.msra.mxu0 %vm189_vm0, %v697_v31 }
  0xa5   : > { %1051 = vmatmul.mubr.msk.f32.vlgmr.msra.gmra.mxu0 %vm186_vm1, %v691_v29 }
  0xa6   : > { %v873_v32 = vpop.permute.xlu1 %872  ;;  %v785_v33 = vpop.permute.xlu0 %784  ;;  %949 = vmatprep.mubr.f32.mxu0 %v1098_v1 }
  0xa7   : > { %v788_v34 = vsel %vm786_vm8, %v783_v27, %v785_v33 }
  0xa8   : > { %1052 = vmatprep.subr.msk.mxu1 %vm189_vm0, %v788_v34 }
  0xaa   : > { %v781_v35 = vpop.permute.xlu0 %780  ;;  %v778_v36 = vpop.permute.xlu1 %777 }
  0xab   : > { %v787_v37 = vsel %vm786_vm8, %v781_v35, %v783_v27 }
  0xac   : > { %1053 = vmatpush1.msk.msra.mxu1 %vm189_vm0, %v787_v37 }
  0xad   : > { %1054 = vmatmul.mubr.msk.f32.vlgmr.msra.gmra.mxu1 %vm186_vm1, %v778_v36 }
  0xae   : > { %v875_v38 = vpop.permute.xlu0 %874  ;;  %v869_v41 = vpop.permute.xlu1 %868 }
  0xaf   : > { %v878_v39 = vsel %vm876_vm9, %v873_v32, %v875_v38 }
  0xb0   : > { %1055 = vmatprep.subr.msk.mxu0 %vm189_vm0, %v878_v39 }
  0xb2   : > { %v871_v40 = vpop.permute.xlu0 %870 }
  0xb3   : > { %v877_v42 = vsel %vm876_vm9, %v871_v40, %v873_v32 }
  0xb4   : > { %1056 = vmatpush1.msk.msra.mxu0 %vm189_vm0, %v877_v42 }
  0xb5   : > { %1057 = vmatmul.mubr.msk.f32.vlgmr.msra.gmra.mxu0 %vm186_vm1, %v869_v41 }
  0xbf   : > { %v961_v9 = vpop.permute.xlu0 %960 }
  0xd5   : > { %v337_v44 = vpop.f32.mrf.mxu1 }
  0xd7   : > { %v339_v46 = vpop.f32.mrf.mxu1 }
 0x149   : > { %v260_v43 = vpop.f32.mrf.mxu0 }
 0x14a   : > { %v338_v52 = vadd.f32 %v337_v44, %v260_v43 }
 0x14b   : > { %v262_v45 = vpop.f32.mrf.mxu0 }
 0x14c   : > { %v340_v54 = vadd.f32 %v339_v46, %v262_v45 }
 0x14d   : > { %v422_v47 = vpop.f32.mrf.mxu0 }
 0x14e   : > { %v427_v55 = vadd.f32 %v422_v47, %v338_v52 }
 0x14f   : > { %v424_v49 = vpop.f32.mrf.mxu0 }
 0x150   : > { %v428_v57 = vadd.f32 %v424_v49, %v340_v54 }
 0x153   : > { %v509_v48 = vpop.f32.mrf.mxu1 }
 0x154   : > { %v514_v58 = vadd.f32 %v509_v48, %v427_v55 }
 0x155   : > { %v511_v50 = vpop.f32.mrf.mxu1 }
 0x156   : > { %v515_v61 = vadd.f32 %v511_v50, %v428_v57 }
 0x159   : > { %v596_v51 = vpop.f32.mrf.mxu0 }
 0x15a   : > { %v601_v62 = vadd.f32 %v596_v51, %v514_v58 }
 0x15b   : > { %v598_v56 = vpop.f32.mrf.mxu0 }
 0x15c   : > { %v602_v0 = vadd.f32 %v598_v56, %v515_v61 }
 0x15f   : > { %v683_v53 = vpop.f32.mrf.mxu1 }
 0x160   : > { %v688_v1 = vadd.f32 %v683_v53, %v601_v62 }
 0x161   : > { %v685_v59 = vpop.f32.mrf.mxu1 }
 0x162   : > { %v689_v3 = vadd.f32 %v685_v59, %v602_v0 }
 0x165   : > { %v770_v60 = vpop.f32.mrf.mxu0 }
 0x166   : > { %v775_v4 = vadd.f32 %v770_v60, %v688_v1 }
 0x167   : > { %v772_v2 = vpop.f32.mrf.mxu0 }
 0x168   : > { %v776_v6 = vadd.f32 %v772_v2, %v689_v3 }
 0x16d   : > { %v861_v63 = vpop.f32.mrf.mxu1 }
 0x16e   : > { %v866_v7 = vadd.f32 %v861_v63, %v775_v4 }
 0x16f   : > { %v863_v5 = vpop.f32.mrf.mxu1 }
 0x170   : > { %v867_v10 = vadd.f32 %v863_v5, %v776_v6 }
 0x175   : > { %v951_v8 = vpop.f32.mrf.mxu0 }
 0x176   : > { %v956_v11 = vadd.f32 %v951_v8, %v866_v7 }
 0x177   : > { %v953_v12 = vpop.f32.mrf.mxu0 }
 0x178   : > { %v957_v13 = vadd.f32 %v953_v12, %v867_v10  ;;  %v963_v14 = vadd.f32 %v961_v9, %v956_v11 }
 0x17a   : > { %v964_v15 = vadd.f32 %v961_v9, %v957_v13  ;;  %965 = vst [vmem:[%s170_s15] sm:$0x3f] %v963_v14 }
 0x17c   : > { %967 = vst.msk [vmem:[%s170_s15 + $0x8] sm:$0x3f] %vm966_vm10, %v964_v15 }
 0x17d PF: > { %s13_s12 = sadd.s32 1, %s1095_s12  }
 0x17e   : > { %p10_p4 = scmp.ge.s32.totalorder %s13_s12, 4  }
 0x180   :  { %12 = sbr.rel (!%p10_p4) target bundleno = 1 (0x1), region = 62 }

</bundles_post_ra>
